<compile_context>
chip_gen: v7x
topology: tpu7x:2x2x1
jax: 0.10.0
libtpu: 0.0.40
codegen_flags: <defaults>
</compile_context>

<pallas_src>
import functools

import jax
import jax.numpy as jnp
import numpy as np
from jax.experimental import pallas as pl
from jax.experimental.pallas import tpu as pltpu


def _round_up(v, m):
    return ((v + m - 1) // m) * m


def _select_tiles(M0, N0, K0):
    """Tile sizes for padded dims (M0 multiple of 8, N0/K0 multiples of 128)."""
    # M tile: fill the MXU M dimension / maximize weight reuse, but keep it at
    # <=128 or exactly 256 so the epilogue row-chunking divides evenly.
    if M0 <= 128:
        tm = M0
    elif M0 < 256:
        tm = 128
    else:
        tm = 256
    # N tile: lane-dense multiple of 128.  When the M grid collapses to a
    # single tile (small-batch inference), keep >= 2 N tiles if N allows so
    # the second v7x TensorCore gets a parallel tile to work on.
    tn = min(N0, 512)
    if M0 <= tm and N0 >= 256 and N0 // tn < 2:
        tn = max(128, ((N0 // 2) // 128) * 128)
    # K tile: as large as comfortably fits (fewer grid steps amortize the
    # ~0.35us/step pipeline overhead); balanced split to avoid K padding.
    if K0 <= 2048:
        tk = K0
    else:
        k_tiles = -(-K0 // 2048)
        tk = _round_up(-(-K0 // k_tiles), 128)
    return tm, tn, tk


def _snn_if_kernel(x_ref, w_ref, b_ref, o_ref, *, time_step, level, theta,
                   tm, tn):
    """One (i, j) output tile: K-reduced matmul + fused IF temporal dynamics.

    x_ref: [tm, tk] bf16  rate-encoded input tile (already divided by level)
    w_ref: [tk, tn] bf16  weight tile
    b_ref: [1,  tn] f32   bias tile
    o_ref: [tm, tn] f32   pre-activation accumulator, rewritten in place with
                          the time-accumulated spike output in the epilogue
    """
    k = pl.program_id(2)

    @pl.when(k == 0)
    def _():
        o_ref[...] = jnp.zeros_like(o_ref)

    # Single hoisted matmul (same drive every timestep); accumulate directly
    # into the output block — its block index is constant across k (P3).
    o_ref[...] += jnp.dot(x_ref[...], w_ref[...],
                          preferred_element_type=jnp.float32)

    @pl.when(k == pl.num_programs(2) - 1)
    def _():
        theta_f = jnp.float32(theta)
        inv_theta = jnp.float32(1.0 / theta)
        n_drive = min(level, time_step)   # steps with non-zero constant input
        n_drain = time_step - n_drive     # steps with zero input

        def if_dynamics(pre, bias_row):
            # Bias realized once at t==0 (membrane starts at b) so that
            # sum_t pre_t == W @ x + b, matching the reference.
            # TODO(synk): LLLinear's exact bias-realization schedule (all at
            # t==0 vs b/level per step) differs only in timing, not total.
            v = jnp.broadcast_to(bias_row, pre.shape)
            cnt = jnp.zeros_like(pre)

            # TODO(synk): plain integrate-and-fire (ORIIFNeuron-style) only;
            # the ST-BIF negative-spike branch of IFNeuron is not modeled.
            def drive_step(_, carry):
                v, cnt = carry
                v = v + pre
                dec = jnp.where(v >= theta_f, theta_f, jnp.float32(0.0))
                return v - dec, cnt + dec     # cnt accumulates spike VALUES

            if n_drive > 0:
                # Partial unroll keeps LLO visibility without vreg blowup for
                # large `level`.
                v, cnt = jax.lax.fori_loop(0, n_drive, drive_step, (v, cnt),
                                           unroll=min(n_drive, 8))

            if n_drain > 0:
                # Zero-input drain of a plain IF neuron fires exactly one
                # spike per step while v >= theta, so the remaining count has
                # an exact closed form -> no per-step work even for T >> level
                # (the module's default T is 2000).
                n_sp = jnp.clip(jnp.floor(v * inv_theta), jnp.float32(0.0),
                                jnp.float32(n_drain))
                cnt = cnt + n_sp * theta_f
            return cnt

        # Chunk the epilogue into (<=128, 128) blocks: keeps pre/v/cnt at
        # ~<=48 live f32 vregs (vs ~96 for a full 128x256 tile) so the
        # unrolled drive loop does not spill.  Chunk count is static and tiny
        # (<= 8), so plain Python loops with static (zero-cost) ref slices are
        # used — each chunk is an independent load -> compute -> store region.
        rc = min(tm, 128)
        for r0 in range(0, tm, rc):
            for c0 in range(0, tn, 128):
                pre = o_ref[r0:r0 + rc, c0:c0 + 128]
                brow = b_ref[0:1, c0:c0 + 128]
                o_ref[r0:r0 + rc, c0:c0 + 128] = if_dynamics(pre, brow)


def make_snn_wrapper_if(weight, bias, x_shape, *, level, time_step, theta):
    """Build the SNNWrapperIF forward for a (synthetic) Linear + IF ANN.

    Weight/bias padding + bf16 cast happen ONCE here (model-conversion time),
    so the per-call HBM traffic is just x, W(bf16), bias and the output.
    """
    B = int(x_shape[0])
    d_in = int(np.prod(x_shape[1:]))
    d_out = int(weight.shape[1])

    M0 = _round_up(max(B, 1), 8)
    N0 = _round_up(d_out, 128)
    K0 = _round_up(d_in, 128)
    tm, tn, tk = _select_tiles(M0, N0, K0)
    M = _round_up(M0, tm)
    N = _round_up(N0, tn)
    K = _round_up(K0, tk)
    k_tiles = K // tk

    # Padded / pre-cast parameters (hoisted out of the forward path).
    w_p = jnp.zeros((K, N), jnp.bfloat16).at[:d_in, :d_out].set(
        weight.astype(jnp.bfloat16))
    b_p = jnp.zeros((1, N), jnp.float32).at[0, :d_out].set(
        bias.astype(jnp.float32))

    kernel = functools.partial(_snn_if_kernel, time_step=int(time_step),
                               level=int(level), theta=float(theta),
                               tm=tm, tn=tn)

    # Short K grids: triple-buffer the weight stream so the first DMA's start
    # latency is not exposed at the head of each (i, j) tile.
    w_spec_kwargs = {}
    if 2 <= k_tiles <= 3:
        w_spec_kwargs["pipeline_mode"] = pl.Buffered(3)
    w_spec = pl.BlockSpec((tk, tn), lambda i, j, k: (k, j), **w_spec_kwargs)

    # VMEM budget derived from the actual tile footprint (double/triple
    # buffered inputs + double-buffered output), kept well under v7x's 64 MiB.
    vmem_bytes = (2 * tm * tk * 2 + 3 * tk * tn * 2
                  + 2 * tn * 4 + 2 * tm * tn * 4)
    vmem_limit = int(min(max(32 * 1024 * 1024, 2 * vmem_bytes),
                         48 * 1024 * 1024))

    snn_call = pl.pallas_call(
        kernel,
        out_shape=jax.ShapeDtypeStruct((M, N), jnp.float32),
        grid_spec=pltpu.PrefetchScalarGridSpec(
            num_scalar_prefetch=0,
            grid=(M // tm, N // tn, k_tiles),
            in_specs=[
                pl.BlockSpec((tm, tk), lambda i, j, k: (i, k)),
                w_spec,
                pl.BlockSpec((1, tn), lambda i, j, k: (0, j)),
            ],
            out_specs=pl.BlockSpec((tm, tn), lambda i, j, k: (i, j)),
        ),
        compiler_params=pltpu.CompilerParams(
            # M/N tiles are independent -> shardable across TensorCores;
            # K is the carried reduction.
            dimension_semantics=("parallel", "parallel", "arbitrary"),
            vmem_limit_bytes=vmem_limit,
        ),
    )

    # TODO(synk): the PyTorch wrapper may exit the while-loop early via the
    # Judger ("network finished"); here the full static T horizon always runs
    # (extra steps see zero input and a draining neuron), and the `verbose`
    # per-timestep accumulator trace is not produced.
    @jax.jit
    def forward(x):
        # Rate encoding: input is x/level for t < level, zero afterwards.
        x_flat = x.reshape(B, d_in).astype(jnp.float32) / jnp.float32(level)
        x_p = jnp.zeros((M, K), jnp.bfloat16).at[:B, :d_in].set(
            x_flat.astype(jnp.bfloat16))
        out = snn_call(x_p, w_p, b_p)
        return out[:B, :d_out]

    return forward


def _reference_forward(x_nchw, weight, bias, *, level, time_step, theta):
    """Pure-JAX reference of the module's temporal loop (f32, HIGHEST prec)."""
    B = x_nchw.shape[0]
    d_in = int(np.prod(x_nchw.shape[1:]))
    d_out = weight.shape[1]
    x = x_nchw.reshape(B, d_in).astype(jnp.float32) / jnp.float32(level)
    v = jnp.zeros((B, d_out), jnp.float32)
    accu = jnp.zeros((B, d_out), jnp.float32)
    for t in range(time_step):
        inp = x if t < level else jnp.zeros_like(x)
        pre = jax.lax.dot(inp, weight.astype(jnp.float32),
                          precision=jax.lax.Precision.HIGHEST)
        if t == 0:
            pre = pre + bias.reshape(1, d_out)
        v = v + pre
        spike = jnp.where(v >= theta, jnp.float32(theta), jnp.float32(0.0))
        v = v - spike
        accu = accu + spike
    return accu


if __name__ == "__main__":
    # Small shapes consistent with the module: NCHW image input.
    B, C, H, W = 2, 4, 16, 16
    D_IN = C * H * W          # 1024
    D_OUT = 128
    LEVEL = 4                 # quantization level / rate-encoding grain
    T = 8                     # time_step
    THETA = 0.25              # IF-neuron threshold (q_threshold)

    key = jax.random.PRNGKey(0)
    kx, kw, kb = jax.random.split(key, 3)
    x = jax.random.normal(kx, (B, C, H, W), jnp.float32)
    # Deterministic "ANN" parameters (Linear D_IN -> D_OUT).
    weight = jax.random.normal(kw, (D_IN, D_OUT), jnp.float32) / jnp.sqrt(D_IN)
    bias = jax.random.normal(kb, (D_OUT,), jnp.float32) * 0.1

    forward = make_snn_wrapper_if(weight, bias, x.shape,
                                  level=LEVEL, time_step=T, theta=THETA)
    out = jax.block_until_ready(forward(x))

    ref = jax.block_until_ready(
        _reference_forward(x, weight, bias,
                           level=LEVEL, time_step=T, theta=THETA))

    # bf16 MXU operands (vs. the f32 HIGHEST reference) perturb the
    # pre-activation by ~1e-3 << theta, which can shift at most one spike per
    # output unit, so the accumulated output differs by at most ~theta.
    max_diff = float(jnp.max(jnp.abs(out - ref)))
    assert out.shape == (B, D_OUT)
    assert max_diff <= THETA * 1.01 + 1e-6, f"max diff {max_diff} too large"

    print("KERNEL_OK")
</pallas_src>

<mosaic_0001>
module attributes {stable_mosaic.version = 11 : i64} {
  func.func @_snn_if_kernel(%arg0: i32, %arg1: i32, %arg2: i32, %arg3: memref<8x1024xbf16, #tpu.memory_space<vmem>>, %arg4: memref<1024x128xbf16, #tpu.memory_space<vmem>>, %arg5: memref<1x128xf32, #tpu.memory_space<vmem>>, %arg6: memref<8x128xf32, #tpu.memory_space<vmem>>) attributes {dimension_semantics = [#tpu.dimension_semantics<parallel>, #tpu.dimension_semantics<parallel>, #tpu.dimension_semantics<arbitrary>], iteration_bounds = array<i64: 1, 1, 1>, scalar_prefetch = 0 : i64, scratch_operands = 0 : i64, tpu.core_type = #tpu.core_type<tc>, window_params = [{transform_indices = @transform_0, window_bounds = array<i64: 8, 1024>}, {transform_indices = @transform_1, window_bounds = array<i64: 1024, 128>}, {transform_indices = @transform_2, window_bounds = array<i64: 1, 128>}, {transform_indices = @transform_3, window_bounds = array<i64: 8, 128>}]} {
    %c0_i32 = arith.constant 0 : i32
    %0 = arith.cmpi eq, %arg2, %c0_i32 : i32
    %1 = arith.extui %0 : i1 to i32
    %c0_i32_0 = arith.constant 0 : i32
    %2 = arith.cmpi ne, %1, %c0_i32_0 : i32
    scf.if %2 {
      %cst_10 = arith.constant 0.000000e+00 : f32
      %12 = vector.broadcast %cst_10 : f32 to vector<8x128xf32>
      %c0_11 = arith.constant 0 : index
      %c0_12 = arith.constant 0 : index
      %13 = vector.load %arg6[%c0_11, %c0_12] : memref<8x128xf32, #tpu.memory_space<vmem>>, vector<8x128xf32>
      tpu.vector_store %arg6[%c0_11, %c0_12], %12 {strides = array<i32>} : memref<8x128xf32, #tpu.memory_space<vmem>>, vector<8x128xf32>,
    } else {
    }
    %c0 = arith.constant 0 : index
    %c0_1 = arith.constant 0 : index
    %3 = vector.load %arg6[%c0, %c0_1] : memref<8x128xf32, #tpu.memory_space<vmem>>, vector<8x128xf32>
    %c0_2 = arith.constant 0 : index
    %c0_3 = arith.constant 0 : index
    %4 = vector.load %arg3[%c0_2, %c0_3] : memref<8x1024xbf16, #tpu.memory_space<vmem>>, vector<8x1024xbf16>
    %c0_4 = arith.constant 0 : index
    %c0_5 = arith.constant 0 : index
    %5 = vector.load %arg4[%c0_4, %c0_5] : memref<1024x128xbf16, #tpu.memory_space<vmem>>, vector<1024x128xbf16>
    %cst = arith.constant dense<0.000000e+00> : vector<8x128xf32>
    %6 = tpu.matmul %4, %5, %cst {dimension_numbers = #tpu.dot_dimension_numbers<[1], [0], [0], [1], [0, 0, 1, 1], [], []>} : vector<8x1024xbf16>, vector<1024x128xbf16>, vector<8x128xf32> -> vector<8x128xf32>
    %7 = arith.addf %3, %6 : vector<8x128xf32>
    %c0_6 = arith.constant 0 : index
    %c0_7 = arith.constant 0 : index
    %8 = vector.load %arg6[%c0_6, %c0_7] : memref<8x128xf32, #tpu.memory_space<vmem>>, vector<8x128xf32>
    tpu.vector_store %arg6[%c0_6, %c0_7], %7 {strides = array<i32>} : memref<8x128xf32, #tpu.memory_space<vmem>>, vector<8x128xf32>,
    %c0_i32_8 = arith.constant 0 : i32
    %9 = arith.cmpi eq, %arg2, %c0_i32_8 : i32
    %10 = arith.extui %9 : i1 to i32
    %c0_i32_9 = arith.constant 0 : i32
    %11 = arith.cmpi ne, %10, %c0_i32_9 : i32
    scf.if %11 {
      %c0_10 = arith.constant 0 : index
      %c0_11 = arith.constant 0 : index
      %12 = vector.load %arg6[%c0_10, %c0_11] : memref<8x128xf32, #tpu.memory_space<vmem>>, vector<8x128xf32>
      %c0_12 = arith.constant 0 : index
      %c0_13 = arith.constant 0 : index
      %13 = vector.load %arg5[%c0_12, %c0_13] : memref<1x128xf32, #tpu.memory_space<vmem>>, vector<1x128xf32>
      %14 = vector.shape_cast %13 : vector<1x128xf32> to vector<1x128xf32>
      %15 = vector.broadcast %14 : vector<1x128xf32> to vector<8x128xf32>
      %cst_14 = arith.constant 0.000000e+00 : f32
      %16 = vector.broadcast %cst_14 : f32 to vector<8x128xf32>
      %cst_15 = arith.constant 2.500000e-01 : f32
      %c0_i32_16 = arith.constant 0 : i32
      %17 = arith.addf %15, %12 : vector<8x128xf32>
      %18 = vector.broadcast %cst_15 : f32 to vector<8x128xf32>
      %19 = arith.cmpf oge, %17, %18 : vector<8x128xf32>
      %cst_17 = arith.constant 0.000000e+00 : f32
      %20 = vector.broadcast %cst_15 : f32 to vector<8x128xf32>
      %21 = vector.broadcast %cst_17 : f32 to vector<8x128xf32>
      %22 = arith.select %19, %20, %21 : vector<8x128xi1>, vector<8x128xf32>
      %23 = arith.subf %17, %22 : vector<8x128xf32>
      %24 = arith.addf %16, %22 : vector<8x128xf32>
      %c1_i32 = arith.constant 1 : i32
      %25 = arith.addf %23, %12 : vector<8x128xf32>
      %26 = vector.broadcast %cst_15 : f32 to vector<8x128xf32>
      %27 = arith.cmpf oge, %25, %26 : vector<8x128xf32>
      %cst_18 = arith.constant 0.000000e+00 : f32
      %28 = vector.broadcast %cst_15 : f32 to vector<8x128xf32>
      %29 = vector.broadcast %cst_18 : f32 to vector<8x128xf32>
      %30 = arith.select %27, %28, %29 : vector<8x128xi1>, vector<8x128xf32>
      %31 = arith.subf %25, %30 : vector<8x128xf32>
      %32 = arith.addf %24, %30 : vector<8x128xf32>
      %c2_i32 = arith.constant 2 : i32
      %33 = arith.addf %31, %12 : vector<8x128xf32>
      %34 = vector.broadcast %cst_15 : f32 to vector<8x128xf32>
      %35 = arith.cmpf oge, %33, %34 : vector<8x128xf32>
      %cst_19 = arith.constant 0.000000e+00 : f32
      %36 = vector.broadcast %cst_15 : f32 to vector<8x128xf32>
      %37 = vector.broadcast %cst_19 : f32 to vector<8x128xf32>
      %38 = arith.select %35, %36, %37 : vector<8x128xi1>, vector<8x128xf32>
      %39 = arith.subf %33, %38 : vector<8x128xf32>
      %40 = arith.addf %32, %38 : vector<8x128xf32>
      %c3_i32 = arith.constant 3 : i32
      %41 = arith.addf %39, %12 : vector<8x128xf32>
      %42 = vector.broadcast %cst_15 : f32 to vector<8x128xf32>
      %43 = arith.cmpf oge, %41, %42 : vector<8x128xf32>
      %cst_20 = arith.constant 0.000000e+00 : f32
      %44 = vector.broadcast %cst_15 : f32 to vector<8x128xf32>
      %45 = vector.broadcast %cst_20 : f32 to vector<8x128xf32>
      %46 = arith.select %43, %44, %45 : vector<8x128xi1>, vector<8x128xf32>
      %47 = arith.subf %41, %46 : vector<8x128xf32>
      %48 = arith.addf %40, %46 : vector<8x128xf32>
      %cst_21 = arith.constant 4.000000e+00 : f32
      %49 = vector.broadcast %cst_21 : f32 to vector<8x128xf32>
      %50 = arith.mulf %47, %49 : vector<8x128xf32>
      %51 = math.floor %50 : vector<8x128xf32>
      %cst_22 = arith.constant 0.000000e+00 : f32
      %cst_23 = arith.constant 4.000000e+00 : f32
      %52 = vector.broadcast %cst_22 : f32 to vector<8x128xf32>
      %53 = arith.maximumf %52, %51 : vector<8x128xf32>
      %54 = vector.broadcast %cst_23 : f32 to vector<8x128xf32>
      %55 = arith.minimumf %54, %53 : vector<8x128xf32>
      %cst_24 = arith.constant 2.500000e-01 : f32
      %56 = vector.broadcast %cst_24 : f32 to vector<8x128xf32>
      %57 = arith.mulf %55, %56 : vector<8x128xf32>
      %58 = arith.addf %48, %57 : vector<8x128xf32>
      %c0_25 = arith.constant 0 : index
      %c0_26 = arith.constant 0 : index
      %59 = vector.load %arg6[%c0_25, %c0_26] : memref<8x128xf32, #tpu.memory_space<vmem>>, vector<8x128xf32>
      tpu.vector_store %arg6[%c0_25, %c0_26], %58 {strides = array<i32>} : memref<8x128xf32, #tpu.memory_space<vmem>>, vector<8x128xf32>,
    } else {
    }
    return
  }
  func.func @transform_0(%arg0: i32, %arg1: i32, %arg2: i32) -> (i32, i32) {
    %c0_i32 = arith.constant 0 : i32
    return %arg0, %arg2 : i32, i32
  }
  func.func @transform_1(%arg0: i32, %arg1: i32, %arg2: i32) -> (i32, i32) {
    %c0_i32 = arith.constant 0 : i32
    return %arg2, %arg1 : i32, i32
  }
  func.func @transform_2(%arg0: i32, %arg1: i32, %arg2: i32) -> (i32, i32) {
    %c0_i32 = arith.constant 0 : i32
    %c0_i32_0 = arith.constant 0 : i32
    return %c0_i32, %arg1 : i32, i32
  }
  func.func @transform_3(%arg0: i32, %arg1: i32, %arg2: i32) -> (i32, i32) {
    %c0_i32 = arith.constant 0 : i32
    return %arg0, %arg1 : i32, i32
  }
}

</mosaic_0001>

<bundles_post_ra>
// kernel: forward.1
= control target key start
LH: loop header
LB: loop body
LE: loop exit
PB: predicated region body
PF: predicated region fallthrough
CT: control target
= control target key end

     0   :  { %8 = vsyncpa [#allocation3], 0  ;;  %s1045_s12 = smov [#allocation2]   ;;  %s1099_s0 = inlined_call_operand.vmem [shape: bf16[8,1024], index: 0, kind: input, shape index: {}]   ;;  %s1100_s1 = inlined_call_operand.hbm [shape: bf16[1024,128], index: 1, kind: input, shape index: {}]   ;;  %s1101_s2 = inlined_call_operand.vmem [shape: f32[1,128], index: 2, kind: input, shape index: {}]   ;;  %s1102_s3 = inlined_call_operand.vmem [shape: f32[8,128], index: 3, kind: output, shape index: {}]  }
   0x1   :  { %s16_s13 = sshll.u32 %s1045_s12, 4  ;;  %s1021_s16 = scalar_lea.hbm %s1100_s1, 8192  ;;  %s17_s13 = int_to_ptr.vmem [resolvable:$true] %s16_s13 }
   0x2   :  { %p1022_p0 = scmp.ne.s32.totalorder %s1100_s1, %s1021_s16  ;;  %p1025_p1 = scmp.lt.u32.totalorder %s1021_s16, %s1100_s1 }
   0x4   :  { %p1027_p2 = pnand %p1025_p1, %p1022_p0 }
   0x6   :  { %1030 = shalt.err (!%p1027_p2)
}
   0x7   :  { %s1031_s21 = scalar_lea.vmem %s17_s13, 8192  ;;  %p1036_p4 = scmp.lt.s32.totalorder %s17_s13, %s17_s13 }
   0x8   :  { %p1032_p3 = scmp.ne.s32.totalorder %s17_s13, %s1031_s21  ;;  %p1037_p5 = scmp.lt.s32.totalorder %s1031_s21, %s1031_s21 }
   0xa   :  { %p1038_p6 = por %p1037_p5, %p1036_p4 }
   0xc   :  { %p1039_p7 = pnand %p1038_p6, %p1032_p3 }
   0xe   :  { %1042 = shalt.err (!%p1039_p7)
}
   0xf   :  { %s1046_s22 = smov 64   ;;  %s1047_s23 = smov 4  }
  0x10   :  { %22 = dma.hbm_to_vmem [thread:$0]  %s1100_s1, 8192, %s17_s13, [#allocation3], %s1046_s22, %s1046_s22, %s1047_s23  }
  0x11   :  { %1043 = dma.done.wait [#allocation3], 8192  }
  0x12   :  { %1044 = vsyncadd [#allocation3], 4294959104  ;;  %v949_v0 = vld [vmem:[#allocation2 + $0x40] sm:$0xff]   ;;  %v953_v4 = vld [vmem:[#allocation2 + $0x48] sm:$0xff]  }
  0x13   :  { %v950_v1 = vld [vmem:[#allocation2 + $0xc0] sm:$0xff]   ;;  %857 = vmatprep.subr.bf16.mxu0 %v949_v0  ;;  %v954_v5 = vld [vmem:[#allocation2 + $0xc8] sm:$0xff]   ;;  %v957_v8 = vld [vmem:[#allocation2 + $0x50] sm:$0xff]  }
  0x14   :  { %v951_v2 = vld [vmem:[#allocation2] sm:$0xff]   ;;  %879 = vmatprep.subr.bf16.mxu1 %v950_v1  ;;  %v955_v6 = vld [vmem:[#allocation2 + $0x8] sm:$0xff]   ;;  %v958_v9 = vld [vmem:[#allocation2 + $0xd0] sm:$0xff]  }
  0x15   :  { %v952_v3 = vld [vmem:[#allocation2 + $0x80] sm:$0xff]   ;;  %858 = vmatpush3.bf16.msra.mxu0 %v951_v2  ;;  %v956_v7 = vld [vmem:[#allocation2 + $0x88] sm:$0xff]   ;;  %v959_v10 = vld [vmem:[#allocation2 + $0x10] sm:$0xff]  }
  0x16   :  { %880 = vmatpush3.bf16.msra.mxu1 %v952_v3  ;;  %859 = vmatprep.subr.bf16.mxu0 %v953_v4  ;;  %v960_v11 = vld [vmem:[#allocation2 + $0x90] sm:$0xff]   ;;  %v961_v12 = vld [vmem:[#allocation2 + $0x58] sm:$0xff]   ;;  %v965_v16 = vld [vmem:[#allocation2 + $0x60] sm:$0xff]  }
  0x17   :  { %881 = vmatprep.subr.bf16.mxu1 %v954_v5  ;;  %v962_v13 = vld [vmem:[#allocation2 + $0xd8] sm:$0xff]   ;;  %v966_v17 = vld [vmem:[#allocation2 + $0xe0] sm:$0xff]   ;;  %v969_v20 = vld [vmem:[#allocation2 + $0x68] sm:$0xff]  }
  0x18   :  { %v963_v14 = vld [vmem:[#allocation2 + $0x18] sm:$0xff]   ;;  %v967_v18 = vld [vmem:[#allocation2 + $0x20] sm:$0xff]   ;;  %v970_v21 = vld [vmem:[#allocation2 + $0xe8] sm:$0xff]  }
  0x19   :  { %860 = vmatpush3.bf16.msra.mxu0 %v955_v6  ;;  %v964_v15 = vld [vmem:[#allocation2 + $0x98] sm:$0xff]   ;;  %v968_v19 = vld [vmem:[#allocation2 + $0xa0] sm:$0xff]   ;;  %v971_v22 = vld [vmem:[#allocation2 + $0x28] sm:$0xff]  }
  0x1a   :  { %882 = vmatpush3.bf16.msra.mxu1 %v956_v7  ;;  %861 = vmatprep.subr.bf16.mxu0 %v957_v8  ;;  %v972_v23 = vld [vmem:[#allocation2 + $0xa8] sm:$0xff]   ;;  %v973_v24 = vld [vmem:[#allocation2 + $0x70] sm:$0xff]   ;;  %v977_v28 = vld [vmem:[#allocation2 + $0x78] sm:$0xff]  }
  0x1b   :  { %883 = vmatprep.subr.bf16.mxu1 %v958_v9  ;;  %v974_v25 = vld [vmem:[#allocation2 + $0xf0] sm:$0xff]   ;;  %v978_v29 = vld [vmem:[#allocation2 + $0xf8] sm:$0xff]   ;;  %v35_v32 = vld [vmem:[%s1099_s0] sm:$0xff] }
  0x1c   :  { %v975_v26 = vld [vmem:[#allocation2 + $0x30] sm:$0xff]   ;;  %v979_v30 = vld [vmem:[#allocation2 + $0x38] sm:$0xff]   ;;  %v36_v33 = vld [vmem:[%s1099_s0 + $0x8] sm:$0xff]  ;;  %v784_v34 = vcombine.low %v35_v32, %v35_v32  ;;  %v785_v35 = vcombine.high %v35_v32, %v35_v32 }
  0x1d   :  { %862 = vmatpush3.bf16.msra.mxu0 %v959_v10  ;;  %v976_v27 = vld [vmem:[#allocation2 + $0xb0] sm:$0xff]   ;;  %v980_v31 = vld [vmem:[#allocation2 + $0xb8] sm:$0xff]   ;;  %v786_v36 = vcombine.low %v36_v33, %v36_v33  ;;  %v787_v37 = vcombine.high %v36_v33, %v36_v33  ;;  %v985_v38 = vld [vmem:[#allocation2 + $0x140] sm:$0xff]  }
  0x1e   :  { %884 = vmatpush3.bf16.msra.mxu1 %v960_v11  ;;  %863 = vmatprep.subr.bf16.mxu0 %v961_v12  ;;  %v986_v39 = vld [vmem:[#allocation2 + $0x1c0] sm:$0xff]   ;;  %v989_v42 = vld [vmem:[#allocation2 + $0x148] sm:$0xff]   ;;  %v993_v46 = vld [vmem:[#allocation2 + $0x150] sm:$0xff]  }
  0x1f   :  { %885 = vmatprep.subr.bf16.mxu1 %v962_v13  ;;  %611 = vmatprep.mubr.bf16.mxu0 %v785_v35  ;;  %v987_v40 = vld [vmem:[#allocation2 + $0x100] sm:$0xff]   ;;  %v990_v43 = vld [vmem:[#allocation2 + $0x1c8] sm:$0xff]   ;;  %v994_v47 = vld [vmem:[#allocation2 + $0x1d0] sm:$0xff]  }
  0x20   :  { %651 = vmatprep.mubr.bf16.mxu1 %v787_v37  ;;  %v988_v41 = vld [vmem:[#allocation2 + $0x180] sm:$0xff]   ;;  %v991_v44 = vld [vmem:[#allocation2 + $0x108] sm:$0xff]   ;;  %v995_v48 = vld [vmem:[#allocation2 + $0x110] sm:$0xff]   ;;  %v1048_v37 = vmov 0.0  }
  0x21   :  { %864 = vmatpush3.bf16.msra.mxu0 %v963_v14  ;;  %v992_v45 = vld [vmem:[#allocation2 + $0x188] sm:$0xff]   ;;  %v996_v49 = vld [vmem:[#allocation2 + $0x190] sm:$0xff]   ;;  %v997_v50 = vld [vmem:[#allocation2 + $0x158] sm:$0xff]  }
  0x22   :  { %886 = vmatpush3.bf16.msra.mxu1 %v964_v15  ;;  %865 = vmatprep.subr.bf16.mxu0 %v965_v16  ;;  %v998_v51 = vld [vmem:[#allocation2 + $0x1d8] sm:$0xff]   ;;  %v1001_v54 = vld [vmem:[#allocation2 + $0x160] sm:$0xff]   ;;  %v1005_v58 = vld [vmem:[#allocation2 + $0x168] sm:$0xff]  }
  0x23   :  { %887 = vmatprep.subr.bf16.mxu1 %v966_v17  ;;  %v999_v52 = vld [vmem:[#allocation2 + $0x118] sm:$0xff]   ;;  %v1002_v55 = vld [vmem:[#allocation2 + $0x1e0] sm:$0xff]   ;;  %v1006_v59 = vld [vmem:[#allocation2 + $0x1e8] sm:$0xff]  }
  0x24   :  { %v1000_v53 = vld [vmem:[#allocation2 + $0x198] sm:$0xff]   ;;  %v1003_v56 = vld [vmem:[#allocation2 + $0x120] sm:$0xff]   ;;  %v1007_v60 = vld [vmem:[#allocation2 + $0x128] sm:$0xff]  }
  0x25   :  { %866 = vmatpush3.bf16.msra.mxu0 %v967_v18  ;;  %v1004_v57 = vld [vmem:[#allocation2 + $0x1a0] sm:$0xff]   ;;  %v1008_v61 = vld [vmem:[#allocation2 + $0x1a8] sm:$0xff]   ;;  %v1009_v62 = vld [vmem:[#allocation2 + $0x170] sm:$0xff]  }
  0x26   :  { %888 = vmatpush3.bf16.msra.mxu1 %v968_v19  ;;  %867 = vmatprep.subr.bf16.mxu0 %v969_v20  ;;  %v1010_v63 = vld [vmem:[#allocation2 + $0x1f0] sm:$0xff]   ;;  %v1013_v2 = vld [vmem:[#allocation2 + $0x178] sm:$0xff]   ;;  %v856_v35 = vld [vmem:[%s1101_s2] ss:$0 sm:$0xff] }
  0x27   :  { %889 = vmatprep.subr.bf16.mxu1 %v970_v21  ;;  %v1011_v0 = vld [vmem:[#allocation2 + $0x130] sm:$0xff]   ;;  %v1014_v3 = vld [vmem:[#allocation2 + $0x1f8] sm:$0xff]  }
  0x28   :  { %v1012_v1 = vld [vmem:[#allocation2 + $0x1b0] sm:$0xff]   ;;  %v1015_v4 = vld [vmem:[#allocation2 + $0x138] sm:$0xff]  }
  0x29   :  { %868 = vmatpush3.bf16.msra.mxu0 %v971_v22  ;;  %v1016_v5 = vld [vmem:[#allocation2 + $0x1b8] sm:$0xff]   ;;  %v37_v6 = vld [vmem:[%s1099_s0 + $0x10] sm:$0xff] }
  0x2a   :  { %890 = vmatpush3.bf16.msra.mxu1 %v972_v23  ;;  %869 = vmatprep.subr.bf16.mxu0 %v973_v24  ;;  %v788_v7 = vcombine.low %v37_v6, %v37_v6  ;;  %v789_v8 = vcombine.high %v37_v6, %v37_v6  ;;  %v38_v9 = vld [vmem:[%s1099_s0 + $0x18] sm:$0xff] }
  0x2b   :  { %891 = vmatprep.subr.bf16.mxu1 %v974_v25  ;;  %v790_v10 = vcombine.low %v38_v9, %v38_v9  ;;  %v791_v11 = vcombine.high %v38_v9, %v38_v9 }
  0x2d   :  { %870 = vmatpush3.bf16.msra.mxu0 %v975_v26 }
  0x2e   :  { %892 = vmatpush3.bf16.msra.mxu1 %v976_v27  ;;  %871 = vmatprep.subr.bf16.mxu0 %v977_v28 }
  0x2f   :  { %893 = vmatprep.subr.bf16.mxu1 %v978_v29 }
  0x31   :  { %872 = vmatpush3.bf16.msra.mxu0 %v979_v30 }
  0x32   :  { %894 = vmatpush3.bf16.msra.mxu1 %v980_v31  ;;  %901 = vmatprep.subr.bf16.mxu0 %v985_v38 }
  0x33   :  { %923 = vmatprep.subr.bf16.mxu1 %v986_v39 }
  0x34   :  { %612 = vmatmul.mubr.bf16.vlgmr.msra.gmra.mrb[0].mxu0 %v784_v34 }
  0x35   :  { %652 = vmatmul.mubr.bf16.vlgmr.msra.gmra.mrb[0].mxu1 %v786_v36  ;;  %902 = vmatpush3.bf16.msra.mxu0 %v987_v40 }
  0x36   :  { %924 = vmatpush3.bf16.msra.mxu1 %v988_v41  ;;  %903 = vmatprep.subr.bf16.mxu0 %v989_v42 }
  0x37   :  { %925 = vmatprep.subr.bf16.mxu1 %v990_v43  ;;  %691 = vmatprep.mubr.bf16.mxu0 %v789_v8 }
  0x38   :  { %731 = vmatprep.mubr.bf16.mxu1 %v791_v11 }
  0x39   :  { %904 = vmatpush3.bf16.msra.mxu0 %v991_v44 }
  0x3a   :  { %926 = vmatpush3.bf16.msra.mxu1 %v992_v45  ;;  %905 = vmatprep.subr.bf16.mxu0 %v993_v46 }
  0x3b   :  { %927 = vmatprep.subr.bf16.mxu1 %v994_v47 }
  0x3d   :  { %906 = vmatpush3.bf16.msra.mxu0 %v995_v48 }
  0x3e   :  { %928 = vmatpush3.bf16.msra.mxu1 %v996_v49  ;;  %907 = vmatprep.subr.bf16.mxu0 %v997_v50 }
  0x3f   :  { %929 = vmatprep.subr.bf16.mxu1 %v998_v51 }
  0x41   :  { %908 = vmatpush3.bf16.msra.mxu0 %v999_v52 }
  0x42   :  { %930 = vmatpush3.bf16.msra.mxu1 %v1000_v53  ;;  %909 = vmatprep.subr.bf16.mxu0 %v1001_v54 }
  0x43   :  { %931 = vmatprep.subr.bf16.mxu1 %v1002_v55 }
  0x45   :  { %910 = vmatpush3.bf16.msra.mxu0 %v1003_v56 }
  0x46   :  { %932 = vmatpush3.bf16.msra.mxu1 %v1004_v57  ;;  %911 = vmatprep.subr.bf16.mxu0 %v1005_v58 }
  0x47   :  { %933 = vmatprep.subr.bf16.mxu1 %v1006_v59 }
  0x49   :  { %912 = vmatpush3.bf16.msra.mxu0 %v1007_v60 }
  0x4a   :  { %934 = vmatpush3.bf16.msra.mxu1 %v1008_v61  ;;  %913 = vmatprep.subr.bf16.mxu0 %v1009_v62 }
  0x4b   :  { %935 = vmatprep.subr.bf16.mxu1 %v1010_v63 }
  0x4d   :  { %914 = vmatpush3.bf16.msra.mxu0 %v1011_v0 }
  0x4e   :  { %936 = vmatpush3.bf16.msra.mxu1 %v1012_v1  ;;  %915 = vmatprep.subr.bf16.mxu0 %v1013_v2 }
  0x4f   :  { %937 = vmatprep.subr.bf16.mxu1 %v1014_v3 }
  0x51   :  { %916 = vmatpush3.bf16.msra.mxu0 %v1015_v4 }
  0x52   :  { %938 = vmatpush3.bf16.msra.mxu1 %v1016_v5 }
  0x54   :  { %692 = vmatmul.mubr.bf16.vlgmr.msra.gmra.mrb[4].mxu0 %v788_v7 }
  0x55   :  { %732 = vmatmul.mubr.bf16.vlgmr.msra.gmra.mrb[4].mxu1 %v790_v10 }
 0x107   :  { %v873_v12 = vpop.f32.mrb[0].mxu0 }
 0x108   :  { %v895_v13 = vpop.f32.mrb[0].mxu1  ;;  %v874_v14 = vpop.f32.mrb[1].mxu0 }
 0x109   :  { %v896_v15 = vpop.f32.mrb[1].mxu1  ;;  %v875_v16 = vadd.f32 %v874_v14, %v873_v12  ;;  %v876_v18 = vpop.f32.mrb[2].mxu0 }
 0x10a   :  { %v897_v17 = vadd.f32 %v896_v15, %v895_v13  ;;  %v898_v19 = vpop.f32.mrb[2].mxu1  ;;  %v877_v20 = vpop.f32.mrb[3].mxu0 }
 0x10b   :  { %v899_v21 = vpop.f32.mrb[3].mxu1 }
 0x10c   :  { %v654_v22 = vadd.f32 %v897_v17, %v875_v16 }
 0x127   :  { %v917_v23 = vpop.f32.mrb[4].mxu0 }
 0x128   :  { %v939_v24 = vpop.f32.mrb[4].mxu1  ;;  %v918_v25 = vpop.f32.mrb[5].mxu0 }
 0x129   :  { %v940_v26 = vpop.f32.mrb[5].mxu1  ;;  %v919_v27 = vadd.f32 %v918_v25, %v917_v23  ;;  %v920_v29 = vpop.f32.mrb[6].mxu0 }
 0x12a   :  { %v941_v28 = vadd.f32 %v940_v26, %v939_v24  ;;  %v942_v30 = vpop.f32.mrb[6].mxu1  ;;  %v921_v31 = vpop.f32.mrb[7].mxu0 }
 0x12b   :  { %v943_v32 = vpop.f32.mrb[7].mxu1  ;;  %v694_v33 = vadd.f32 %v919_v27, %v654_v22 }
 0x12d   :  { %v734_v34 = vadd.f32 %v941_v28, %v694_v33 }
 0x12f   :  { %v752_v36 = vadd.f32 %v856_v35, %v734_v34 }
 0x131   :  { %vm753_vm0 = vcmp.ge.f32.partialorder %v752_v36, 0.25 }
 0x132   :  { %v754_v38 = vsel %vm753_vm0, 0.25, %v1048_v37 }
 0x133   :  { %v755_v39 = vsub.f32 %v752_v36, %v754_v38 }
 0x135   :  { %v757_v40 = vadd.f32 %v755_v39, %v734_v34 }
 0x137   :  { %vm758_vm1 = vcmp.ge.f32.partialorder %v757_v40, 0.25 }
 0x138   :  { %v759_v41 = vsel %vm758_vm1, 0.25, %v1048_v37 }
 0x139   :  { %v760_v42 = vsub.f32 %v757_v40, %v759_v41  ;;  %v761_v51 = vadd.f32 %v759_v41, %v754_v38 }
 0x13b   :  { %v762_v43 = vadd.f32 %v760_v42, %v734_v34 }
 0x13d   :  { %vm763_vm2 = vcmp.ge.f32.partialorder %v762_v43, 0.25 }
 0x13e   :  { %v764_v44 = vsel %vm763_vm2, 0.25, %v1048_v37 }
 0x13f   :  { %v765_v45 = vsub.f32 %v762_v43, %v764_v44  ;;  %v766_v53 = vadd.f32 %v764_v44, %v761_v51 }
 0x141   :  { %v767_v46 = vadd.f32 %v765_v45, %v734_v34 }
 0x143   :  { %vm768_vm3 = vcmp.ge.f32.partialorder %v767_v46, 0.25 }
 0x144   :  { %v769_v47 = vsel %vm768_vm3, 0.25, %v1048_v37 }
 0x145   :  { %v770_v48 = vsub.f32 %v767_v46, %v769_v47  ;;  %v771_v55 = vadd.f32 %v769_v47, %v766_v53 }
 0x147   :  { %v772_v49 = vmul.f32 4.0, %v770_v48 }
 0x149   :  { %v773_v50 = vfloor.f32 %v772_v49 }
 0x14b   :  { %v774_v52 = vmax.f32 %v773_v50, 0.0 }
 0x14d   :  { %v775_v54 = vmin.f32 %v774_v52, 4.0 }
 0x14f   :  { %v776_v56 = vmul.f32 0.25, %v775_v54 }
 0x151   :  { %v777_v57 = vadd.f32 %v776_v56, %v771_v55 }
 0x153   :  { %778 = vst [vmem:[%s1102_s3] sm:$0xff] %v777_v57 }
 0x154   :  { %783 = vsyncpa [#allocation3], 1 }

</bundles_post_ra>
